<compile_context>
chip_gen: v6e
topology: v6e:2x2x1
jax: 0.10.0
libtpu: 0.0.40
codegen_flags: <defaults>
</compile_context>

<pallas_src>
import jax
import jax.numpy as jnp
from jax import lax
from jax.experimental import pallas as pl
from jax.experimental.pallas import tpu as pltpu


def _policy_net_kernel(x_ref, w1_ref, b1_ref, w2_ref, b2_ref, out_ref):
    """One batch tile, PyTorch layouts end to end.

    x_ref  : (tb, S)  input block (PyTorch row-major batch layout)
    w1_ref : (H, S)   fc1 weight, PyTorch (out_features, in_features), VMEM-resident
    b1_ref : (1, H)
    w2_ref : (A, H)   fc2 weight
    b2_ref : (1, A)
    out_ref: (tb, A)  logits, written directly in PyTorch layout (no post-transpose)
    """
    x = x_ref[...]
    # h = x @ W1^T -> (tb, H); the nn.Linear transpose is folded into the
    # contraction (contract last dim of both operands), nothing is materialized.
    h = lax.dot_general(
        x, w1_ref[...],
        dimension_numbers=(((1,), (1,)), ((), ())),
        preferred_element_type=jnp.float32,
    )
    h = jnp.maximum(h + b1_ref[...], 0.0)  # bias broadcasts over the batch rows + ReLU
    # y = h @ W2^T -> (tb, A)
    y = lax.dot_general(
        h, w2_ref[...],
        dimension_numbers=(((1,), (1,)), ((), ())),
        preferred_element_type=jnp.float32,
    )
    out_ref[...] = (y + b2_ref[...]).astype(out_ref.dtype)
    # TODO(synk): fuse downstream action selection (softmax/argmax/categorical sample)
    # here when the caller does not need raw logits; the PyTorch module returns logits.


# Padded VMEM per batch row is ~512 B for the x tile + ~512 B for the out tile
# (both lane-padded to 128) plus ~256 B of intermediates; 2048 rows, double-buffered,
# stays around ~6 MiB -> fits v5e's 16 MiB scoped default and v7x's 32 MiB default.
_MAX_TILE = 2048


def _pick_batch_tile(batch):
    if batch <= _MAX_TILE:
        return batch  # grid = (1,): single step, no per-step overhead
    for t in (2048, 1024, 512, 256, 128, 64, 32, 16, 8):
        if batch % t == 0:
            return t
    # Non-divisible oversized batch: max tile + cdiv grid; Pallas pads the last
    # partial block and masks its writes (rows are independent, so this is safe).
    return _MAX_TILE


@jax.jit
def policy_net_forward(x, w1, b1, w2, b2):
    """PolicyNet forward:  relu(x @ w1.T + b1) @ w2.T + b2.

    x : (B, state_dim) float32
    w1: (64, state_dim), b1: (64,)      (PyTorch nn.Linear layouts)
    w2: (action_dim, 64), b2: (action_dim,)
    returns (B, action_dim) float32 logits.
    """
    B, S = x.shape
    H = w1.shape[0]
    A = w2.shape[0]

    # Contiguous (bitcast-only) reshapes; no per-call weight transposes.
    b1c = b1.reshape(1, H)
    b2c = b2.reshape(1, A)

    tb = _pick_batch_tile(B)
    grid = (pl.cdiv(B, tb),)

    return pl.pallas_call(
        _policy_net_kernel,
        out_shape=jax.ShapeDtypeStruct((B, A), jnp.float32),
        grid_spec=pltpu.PrefetchScalarGridSpec(
            num_scalar_prefetch=0,
            grid=grid,
            in_specs=[
                pl.BlockSpec((tb, S), lambda i: (i, 0)),   # x: tiled over batch
                pl.BlockSpec((H, S), lambda i: (0, 0)),    # weights/biases: constant
                pl.BlockSpec((1, H), lambda i: (0, 0)),    #   index_map -> VMEM-resident,
                pl.BlockSpec((A, H), lambda i: (0, 0)),    #   DMA'd once, never re-fetched
                pl.BlockSpec((1, A), lambda i: (0, 0)),
            ],
            out_specs=pl.BlockSpec((tb, A), lambda i: (i, 0)),  # PyTorch (B, A) layout
        ),
        compiler_params=pltpu.CompilerParams(
            # grid is almost always (1,); "parallel" vs "arbitrary" is a no-op and a
            # v7x CORE_PARALLEL split is not worth an extra step on a latency-bound op.
            dimension_semantics=("arbitrary",),
            vmem_limit_bytes=32 << 20,  # headroom on v5e (16 MiB default), safe on v7x
        ),
    )(x, w1, b1c, w2, b2c)


def init_params(key, state_dim, action_dim, hidden=64):
    """Deterministic init mimicking nn.Linear's uniform(-1/sqrt(fan_in), 1/sqrt(fan_in))."""
    k1, k2, k3, k4 = jax.random.split(key, 4)
    bound1 = 1.0 / jnp.sqrt(state_dim)
    bound2 = 1.0 / jnp.sqrt(hidden)
    w1 = jax.random.uniform(k1, (hidden, state_dim), jnp.float32, -bound1, bound1)
    b1 = jax.random.uniform(k2, (hidden,), jnp.float32, -bound1, bound1)
    w2 = jax.random.uniform(k3, (action_dim, hidden), jnp.float32, -bound2, bound2)
    b2 = jax.random.uniform(k4, (action_dim,), jnp.float32, -bound2, bound2)
    return w1, b1, w2, b2


if __name__ == "__main__":
    state_dim, action_dim, hidden = 4, 2, 64  # CartPole-like dims

    key = jax.random.PRNGKey(0)
    kx, kp, kx2, kx3 = jax.random.split(key, 4)
    w1, b1, w2, b2 = init_params(kp, state_dim, action_dim, hidden)

    def reference(x):
        return jnp.maximum(x @ w1.T + b1, 0.0) @ w2.T + b2

    # Small single-step batch (grid=(1,), full-array blocks).
    x_small = jax.random.normal(kx, (8, state_dim), jnp.float32)
    out_small = jax.block_until_ready(policy_net_forward(x_small, w1, b1, w2, b2))
    assert out_small.shape == (8, action_dim)
    assert jnp.allclose(out_small, reference(x_small), atol=1e-5, rtol=1e-5)

    # Rollout-style batch: still a single grid step (tb = 1024 <= _MAX_TILE).
    x_big = jax.random.normal(kx2, (1024, state_dim), jnp.float32)
    out_big = jax.block_until_ready(policy_net_forward(x_big, w1, b1, w2, b2))
    assert out_big.shape == (1024, action_dim)
    assert jnp.allclose(out_big, reference(x_big), atol=1e-5, rtol=1e-5)

    # Larger batch exercising the tiled multi-step path (tb=2048, grid=(2,)),
    # with weights resident in VMEM across the steps.
    x_huge = jax.random.normal(kx3, (4096, state_dim), jnp.float32)
    out_huge = jax.block_until_ready(policy_net_forward(x_huge, w1, b1, w2, b2))
    assert out_huge.shape == (4096, action_dim)
    assert jnp.allclose(out_huge, reference(x_huge), atol=1e-5, rtol=1e-5)

    print("KERNEL_OK")
</pallas_src>

<mosaic_0001>
module attributes {stable_mosaic.version = 11 : i64} {
  func.func @_policy_net_kernel(%arg0: i32, %arg1: memref<8x4xf32, #tpu.memory_space<vmem>>, %arg2: memref<64x4xf32, #tpu.memory_space<vmem>>, %arg3: memref<1x64xf32, #tpu.memory_space<vmem>>, %arg4: memref<2x64xf32, #tpu.memory_space<vmem>>, %arg5: memref<1x2xf32, #tpu.memory_space<vmem>>, %arg6: memref<8x2xf32, #tpu.memory_space<vmem>>) attributes {dimension_semantics = [#tpu.dimension_semantics<arbitrary>], iteration_bounds = array<i64: 1>, scalar_prefetch = 0 : i64, scratch_operands = 0 : i64, tpu.core_type = #tpu.core_type<tc>, window_params = [{transform_indices = @transform_0, window_bounds = array<i64: 8, 4>}, {pipeline_mode = #tpu.pipeline_mode<synchronous>, transform_indices = @transform_1, window_bounds = array<i64: 64, 4>}, {pipeline_mode = #tpu.pipeline_mode<synchronous>, transform_indices = @transform_2, window_bounds = array<i64: 1, 64>}, {pipeline_mode = #tpu.pipeline_mode<synchronous>, transform_indices = @transform_3, window_bounds = array<i64: 2, 64>}, {pipeline_mode = #tpu.pipeline_mode<synchronous>, transform_indices = @transform_4, window_bounds = array<i64: 1, 2>}, {transform_indices = @transform_5, window_bounds = array<i64: 8, 2>}]} {
    %c0 = arith.constant 0 : index
    %c0_0 = arith.constant 0 : index
    %0 = vector.load %arg1[%c0, %c0_0] : memref<8x4xf32, #tpu.memory_space<vmem>>, vector<8x4xf32>
    %c0_1 = arith.constant 0 : index
    %c0_2 = arith.constant 0 : index
    %1 = vector.load %arg2[%c0_1, %c0_2] : memref<64x4xf32, #tpu.memory_space<vmem>>, vector<64x4xf32>
    %cst = arith.constant dense<0.000000e+00> : vector<8x64xf32>
    %2 = tpu.matmul %0, %1, %cst {dimension_numbers = #tpu.dot_dimension_numbers<[1], [1], [0], [0], [0, 0, 1, 0], [], []>} : vector<8x4xf32>, vector<64x4xf32>, vector<8x64xf32> -> vector<8x64xf32>
    %c0_3 = arith.constant 0 : index
    %c0_4 = arith.constant 0 : index
    %3 = vector.load %arg3[%c0_3, %c0_4] : memref<1x64xf32, #tpu.memory_space<vmem>>, vector<1x64xf32>
    %4 = vector.broadcast %3 : vector<1x64xf32> to vector<8x64xf32>
    %5 = arith.addf %2, %4 : vector<8x64xf32>
    %cst_5 = arith.constant 0.000000e+00 : f32
    %6 = vector.broadcast %cst_5 : f32 to vector<8x64xf32>
    %7 = arith.maximumf %5, %6 : vector<8x64xf32>
    %c0_6 = arith.constant 0 : index
    %c0_7 = arith.constant 0 : index
    %8 = vector.load %arg4[%c0_6, %c0_7] : memref<2x64xf32, #tpu.memory_space<vmem>>, vector<2x64xf32>
    %cst_8 = arith.constant dense<0.000000e+00> : vector<8x2xf32>
    %9 = tpu.matmul %7, %8, %cst_8 {dimension_numbers = #tpu.dot_dimension_numbers<[1], [1], [0], [0], [0, 0, 1, 0], [], []>} : vector<8x64xf32>, vector<2x64xf32>, vector<8x2xf32> -> vector<8x2xf32>
    %c0_9 = arith.constant 0 : index
    %c0_10 = arith.constant 0 : index
    %10 = vector.load %arg5[%c0_9, %c0_10] : memref<1x2xf32, #tpu.memory_space<vmem>>, vector<1x2xf32>
    %11 = vector.broadcast %10 : vector<1x2xf32> to vector<8x2xf32>
    %12 = arith.addf %9, %11 : vector<8x2xf32>
    %c0_11 = arith.constant 0 : index
    %c0_12 = arith.constant 0 : index
    %13 = vector.load %arg6[%c0_11, %c0_12] : memref<8x2xf32, #tpu.memory_space<vmem>>, vector<8x2xf32>
    tpu.vector_store %arg6[%c0_11, %c0_12], %12 {strides = array<i32>} : memref<8x2xf32, #tpu.memory_space<vmem>>, vector<8x2xf32>,
    return
  }
  func.func @transform_0(%arg0: i32) -> (i32, i32) {
    %c0_i32 = arith.constant 0 : i32
    %c0_i32_0 = arith.constant 0 : i32
    return %arg0, %c0_i32 : i32, i32
  }
  func.func @transform_1(%arg0: i32) -> (i32, i32) {
    %c0_i32 = arith.constant 0 : i32
    %c0_i32_0 = arith.constant 0 : i32
    %c0_i32_1 = arith.constant 0 : i32
    return %c0_i32, %c0_i32_0 : i32, i32
  }
  func.func @transform_2(%arg0: i32) -> (i32, i32) {
    %c0_i32 = arith.constant 0 : i32
    %c0_i32_0 = arith.constant 0 : i32
    %c0_i32_1 = arith.constant 0 : i32
    return %c0_i32, %c0_i32_0 : i32, i32
  }
  func.func @transform_3(%arg0: i32) -> (i32, i32) {
    %c0_i32 = arith.constant 0 : i32
    %c0_i32_0 = arith.constant 0 : i32
    %c0_i32_1 = arith.constant 0 : i32
    return %c0_i32, %c0_i32_0 : i32, i32
  }
  func.func @transform_4(%arg0: i32) -> (i32, i32) {
    %c0_i32 = arith.constant 0 : i32
    %c0_i32_0 = arith.constant 0 : i32
    %c0_i32_1 = arith.constant 0 : i32
    return %c0_i32, %c0_i32_0 : i32, i32
  }
  func.func @transform_5(%arg0: i32) -> (i32, i32) {
    %c0_i32 = arith.constant 0 : i32
    %c0_i32_0 = arith.constant 0 : i32
    return %arg0, %c0_i32 : i32, i32
  }
}

</mosaic_0001>

<bundles_post_ra>
// kernel: policy_net_forward.1
= control target key start
LH: loop header
LB: loop body
LE: loop exit
PB: predicated region body
PF: predicated region fallthrough
CT: control target
= control target key end

     0   :  { %vm36_vm0 = vcmask 31744   ;;  %v276_v0 = vmov 0.0   ;;  %vm277_vm1 = vmmov 0   ;;  %vm143_vm2 = vcmask 523264   ;;  %s356_s1 = inlined_call_operand.vmem [shape: f32[64,4], index: 1, kind: input, shape index: {}]   ;;  %s357_s0 = inlined_call_operand.vmem [shape: f32[8,4], index: 0, kind: input, shape index: {}]   ;;  %s358_s3 = inlined_call_operand.vmem [shape: f32[2,64], index: 3, kind: input, shape index: {}]   ;;  %s359_s2 = inlined_call_operand.vmem [shape: f32[1,64], index: 2, kind: input, shape index: {}]   ;;  %s360_s4 = inlined_call_operand.vmem [shape: f32[1,2], index: 4, kind: input, shape index: {}]   ;;  %s361_s5 = inlined_call_operand.vmem [shape: f32[8,2], index: 5, kind: output, shape index: {}]  }
   0x1   :  { %250 = vmatprep.subr.mxu0 %v276_v0  ;;  %v28_v1 = vld [vmem:[%s356_s1 + $0x38] sm:$0xff]  ;;  %266 = vmatprep.mubr.msk.f32.mxu0 %vm277_vm1, %v276_v0  ;;  %v27_v2 = vld [vmem:[%s356_s1 + $0x30] sm:$0xff]  ;;  %v26_v3 = vld [vmem:[%s356_s1 + $0x28] sm:$0xff]  ;;  %vm220_vm3 = vcmask 15360  }
   0x2   :  { %251 = vmatpush3.xpose.msk.msra.mxu0 %vm36_vm0, %v28_v1  ;;  %269 = vmatprep.subr.mxu1 %v276_v0  ;;  %v25_v4 = vld [vmem:[%s356_s1 + $0x20] sm:$0xff]  ;;  %v24_v5 = vld [vmem:[%s356_s1 + $0x18] sm:$0xff]  ;;  %v23_v6 = vld [vmem:[%s356_s1 + $0x10] sm:$0xff] }
   0x3   :  { %252 = vmatprep.subr.mxu0 %v276_v0  ;;  %271 = vmatprep.mubr.msk.f32.mxu1 %vm277_vm1, %v276_v0  ;;  %v22_v7 = vld [vmem:[%s356_s1 + $0x8] sm:$0xff]  ;;  %v21_v8 = vld [vmem:[%s356_s1] sm:$0xff] }
   0x4   :  { %v20_v9 = vld [vmem:[%s357_s0] sm:$0xff] }
   0x5   :  { %v135_v10 = vld [vmem:[%s358_s3] sm:$0x3] }
   0x6   :  { %253 = vmatpush3.xpose.msk.msra.mxu0 %vm36_vm0, %v27_v2  ;;  %270 = vmatpush3.xpose.msk.msra.mxu1 %vm143_vm2, %v135_v10  ;;  %v226_v11 = vld [vmem:[%s359_s2] ss:$0 sm:$0xff] }
   0x7   :  { %254 = vmatprep.subr.mxu0 %v276_v0  ;;  %v236_v16 = vld [vmem:[%s360_s4] ss:$0 sm:$0xff] }
   0xa   :  { %255 = vmatpush3.xpose.msk.msra.mxu0 %vm36_vm0, %v26_v3 }
   0xb   :  { %256 = vmatprep.subr.mxu0 %v276_v0 }
   0xe   :  { %257 = vmatpush3.xpose.msk.msra.mxu0 %vm36_vm0, %v25_v4 }
   0xf   :  { %258 = vmatprep.subr.mxu0 %v276_v0 }
  0x12   :  { %259 = vmatpush3.xpose.msk.msra.mxu0 %vm36_vm0, %v24_v5 }
  0x13   :  { %260 = vmatprep.subr.mxu0 %v276_v0 }
  0x16   :  { %261 = vmatpush3.xpose.msk.msra.mxu0 %vm36_vm0, %v23_v6 }
  0x17   :  { %262 = vmatprep.subr.mxu0 %v276_v0 }
  0x1a   :  { %263 = vmatpush3.xpose.msk.msra.mxu0 %vm36_vm0, %v22_v7 }
  0x1b   :  { %264 = vmatprep.subr.mxu0 %v276_v0 }
  0x1e   :  { %265 = vmatpush3.xpose.msk.msra.mxu0 %vm36_vm0, %v21_v8 }
  0x21   :  { %267 = vmatmul.mubr.msk.f32.vlgmr.msra.gmra.mxu0 %vm36_vm0, %v20_v9 }
  0xe1   :  { %v130_v12 = vpop.f32.mrf.mxu0 }
  0xe2   :  { %v131_v13 = vadd.f32 %v226_v11, %v130_v12 }
  0xe3   :  { %v268_v14 = vpop.f32.mrf.mxu0 }
  0xe4   :  { %v134_v15 = vmax.f32 %v131_v13, 0.0 }
  0xe6   :  { %272 = vmatmul.mubr.msk.f32.vlgmr.msra.gmra.mxu1 %vm143_vm2, %v134_v15 }
 0x1a6   :  { %v216_v17 = vpop.f32.mrf.mxu1 }
 0x1a7   :  { %v217_v18 = vadd.f32 %v236_v16, %v216_v17 }
 0x1a8   :  { %v273_v19 = vpop.f32.mrf.mxu1 }
 0x1a9   :  { %221 = vst.msk [vmem:[%s361_s5] sm:$0xff] %vm220_vm3, %v217_v18 }

</bundles_post_ra>
